<compile_context>
chip_gen: v5e
topology: v5e:2x2
jax: 0.10.0
libtpu: 0.0.40
codegen_flags: <defaults>
</compile_context>

<pallas_src>
import math

import jax
import jax.numpy as jnp
from jax.experimental import pallas as pl
from jax.experimental.pallas import tpu as pltpu

_LANE = 128
_VMEM_TARGET_BYTES = 1 << 20  # ~1 MiB per block buffer


def _pick_lane_tile(granule, n_rows, itemsize):
    """Largest multiple-of-128 divisor of `granule` with block <= ~1 MiB.

    Returns None if `granule` is not a multiple of 128 (caller falls back to a
    whole-array copy path).
    """
    if granule <= 0 or granule % _LANE != 0:
        return None
    g = granule // _LANE
    cap = max(1, _VMEM_TARGET_BYTES // max(1, n_rows * itemsize * _LANE))
    best = 1
    for d in range(1, min(g, cap) + 1):
        if g % d == 0:
            best = d
    return best * _LANE


def _copy_kernel(x_ref, o_ref):
    o_ref[...] = x_ref[...]


def _lane_slice_copy(src2d, lane_offset, lane_size):
    """out = src2d[:, lane_offset:lane_offset+lane_size] via a Pallas copy."""
    n, _total = src2d.shape
    dtype = src2d.dtype
    if lane_size == 0:
        return jnp.zeros((n, 0), dtype)

    # The lane tile must divide both the slice size and the element offset so
    # the input index_map can address the slice in whole blocks.
    granule = math.gcd(lane_size, lane_offset) if lane_offset else lane_size
    tl = _pick_lane_tile(granule, n, jnp.dtype(dtype).itemsize)

    if tl is None:
        # Shape not 128-lane friendly: whole-array blocks, slice in-kernel.
        def _fallback(x_ref, o_ref):
            o_ref[...] = x_ref[:, lane_offset:lane_offset + lane_size]

        return pl.pallas_call(
            _fallback,
            out_shape=jax.ShapeDtypeStruct((n, lane_size), dtype),
        )(src2d)

    off_blk = lane_offset // tl
    return pl.pallas_call(
        _copy_kernel,
        out_shape=jax.ShapeDtypeStruct((n, lane_size), dtype),
        grid=(lane_size // tl,),
        in_specs=[pl.BlockSpec((n, tl), lambda j: (0, off_blk + j))],
        out_specs=pl.BlockSpec((n, tl), lambda j: (0, j)),
        compiler_params=pltpu.CompilerParams(
            dimension_semantics=("parallel",)),
    )(src2d)


def split_forward(x):
    """Equivalent of Split()(x, reverse=False). Returns (x1, x2)."""
    n, c, h, w = x.shape
    c1 = c // 2
    c2 = c - c1
    hw = h * w
    x2d = x.reshape(n, c * hw)
    x1 = _lane_slice_copy(x2d, 0, c1 * hw).reshape(n, c1, h, w)
    x2 = _lane_slice_copy(x2d, c1 * hw, c2 * hw).reshape(n, c2, h, w)
    return x1, x2


def split_reverse(x, y):
    """Equivalent of Split()(x, y, reverse=True). Returns concat([x, y], 1)."""
    assert y is not None, "y must be given"
    n, c1, h, w = x.shape
    n2, c2, h2, w2 = y.shape
    assert (n, h, w) == (n2, h2, w2), "x and y must match on N, H, W"
    assert x.dtype == y.dtype, "x and y must share a dtype"
    if c1 == 0:
        return y
    if c2 == 0:
        return x

    hw = h * w
    sx, sy = c1 * hw, c2 * hw
    dtype = x.dtype
    x2d = x.reshape(n, sx)
    y2d = y.reshape(n, sy)

    tl = _pick_lane_tile(math.gcd(sx, sy), n, jnp.dtype(dtype).itemsize)

    if tl is None:
        # Fallback: whole-array blocks, write both halves in-kernel.
        def _fallback(a_ref, b_ref, o_ref):
            o_ref[:, :sx] = a_ref[...]
            o_ref[:, sx:] = b_ref[...]

        out2d = pl.pallas_call(
            _fallback,
            out_shape=jax.ShapeDtypeStruct((n, sx + sy), dtype),
        )(x2d, y2d)
        return out2d.reshape(n, c1 + c2, h, w)

    nx = sx // tl
    ny = sy // tl

    def _concat_kernel(x_ref, y_ref, o_ref):
        j = pl.program_id(0)

        @pl.when(j < nx)
        def _():
            o_ref[...] = x_ref[...]

        @pl.when(j >= nx)
        def _():
            o_ref[...] = y_ref[...]

    out2d = pl.pallas_call(
        _concat_kernel,
        out_shape=jax.ShapeDtypeStruct((n, sx + sy), dtype),
        grid=(nx + ny,),
        in_specs=[
            # Clamp the inactive half's block index: Pallas elides the re-DMA
            # when a block index repeats, so each input is fetched only once.
            pl.BlockSpec((n, tl), lambda j: (0, jnp.minimum(j, nx - 1))),
            pl.BlockSpec((n, tl), lambda j: (0, jnp.maximum(j - nx, 0))),
        ],
        out_specs=pl.BlockSpec((n, tl), lambda j: (0, j)),
        compiler_params=pltpu.CompilerParams(
            dimension_semantics=("parallel",)),
    )(x2d, y2d)
    return out2d.reshape(n, c1 + c2, h, w)


def split_module(x, y=None, reverse=False):
    """Drop-in functional equivalent of Split.forward."""
    if not reverse:
        return split_forward(x)
    return split_reverse(x, y)


if __name__ == "__main__":
    key = jax.random.PRNGKey(0)
    n, c, h, w = 2, 4, 16, 16
    x = jax.random.normal(key, (n, c, h, w), dtype=jnp.float32)

    # forward: split
    x1, x2 = split_module(x, reverse=False)
    x1, x2 = jax.block_until_ready((x1, x2))

    ref1 = x[:, : c // 2, :, :]
    ref2 = x[:, c // 2:, :, :]
    assert x1.shape == ref1.shape and x2.shape == ref2.shape
    assert jnp.allclose(x1, ref1) and jnp.allclose(x2, ref2)

    # reverse: concat back
    x_rec = split_module(x1, x2, reverse=True)
    x_rec = jax.block_until_ready(x_rec)
    assert x_rec.shape == x.shape
    assert jnp.allclose(x_rec, x)

    print("KERNEL_OK")
</pallas_src>

<mosaic_0001>
module attributes {stable_mosaic.version = 11 : i64} {
  func.func @_copy_kernel(%arg0: i32, %arg1: memref<2x512xf32, #tpu.memory_space<vmem>>, %arg2: memref<2x512xf32, #tpu.memory_space<vmem>>) attributes {dimension_semantics = [#tpu.dimension_semantics<parallel>], iteration_bounds = array<i64: 1>, scalar_prefetch = 0 : i64, scratch_operands = 0 : i64, tpu.core_type = #tpu.core_type<tc>, window_params = [{transform_indices = @transform_0, window_bounds = array<i64: 2, 512>}, {transform_indices = @transform_1, window_bounds = array<i64: 2, 512>}]} {
    %c0 = arith.constant 0 : index
    %c0_0 = arith.constant 0 : index
    %0 = vector.load %arg1[%c0, %c0_0] : memref<2x512xf32, #tpu.memory_space<vmem>>, vector<2x512xf32>
    %c0_1 = arith.constant 0 : index
    %c0_2 = arith.constant 0 : index
    %1 = vector.load %arg2[%c0_1, %c0_2] : memref<2x512xf32, #tpu.memory_space<vmem>>, vector<2x512xf32>
    tpu.vector_store %arg2[%c0_1, %c0_2], %0 {strides = array<i32>} : memref<2x512xf32, #tpu.memory_space<vmem>>, vector<2x512xf32>,
    return
  }
  func.func @transform_0(%arg0: i32) -> (i32, i32) {
    %c0_i32 = arith.constant 0 : i32
    %0 = arith.addi %c0_i32, %arg0 : i32
    %c0_i32_0 = arith.constant 0 : i32
    %c0_i32_1 = arith.constant 0 : i32
    return %c0_i32_0, %0 : i32, i32
  }
  func.func @transform_1(%arg0: i32) -> (i32, i32) {
    %c0_i32 = arith.constant 0 : i32
    %c0_i32_0 = arith.constant 0 : i32
    return %c0_i32, %arg0 : i32, i32
  }
}

</mosaic_0001>

<bundles_post_ra>
// kernel: tpu_custom_call.1
= control target key start
LH: loop header
LB: loop body
LE: loop exit
PB: predicated region body
PF: predicated region fallthrough
CT: control target
= control target key end

     0   :  { %6 = vsyncpa [#allocation3], 0  ;;  %s114_s0 = inlined_call_operand.hbm [shape: f32[2,1024], index: 0, kind: input, shape index: {}]   ;;  %s115_s1 = inlined_call_operand.hbm [shape: f32[2,512], index: 1, kind: output, shape index: {}]  }
   0x1   :  { %7 = vsyncpa [#allocation4], 0  ;;  %s13_s8 = sshll.u32 %s114_s0, 4  ;;  %s96_s9 = smov [#allocation2]   ;;  %s14_s8 = int_to_ptr.hbm [resolvable:$true] %s13_s8 }
   0x2   :  { %s15_s10 = sshll.u32 %s96_s9, 4  ;;  %s16_s10 = int_to_ptr.vmem [resolvable:$true] %s15_s10 }
   0x3   :  { %18 = dma.hbm_to_vmem [thread:$0]  %s14_s8, 128, %s16_s10, [#allocation3]  }
   0x4   :  { %92 = dma.done.wait [#allocation3], 128  }
   0x5   :  { %93 = vsyncadd [#allocation3], 4294967168  ;;  %s97_s11 = smov [#allocation5]   ;;  %s32_s15 = sshll.u32 %s115_s1, 4  ;;  %v23_v0 = vld [vmem:[#allocation2] sm:$0xff]  ;;  %s33_s15 = int_to_ptr.hbm [resolvable:$true] %s32_s15 }
   0x6   :  { %s30_s12 = sshll.u32 %s97_s11, 4  ;;  %24 = vst [vmem:[#allocation5] sm:$0xff] %v23_v0  ;;  %s31_s12 = int_to_ptr.vmem [resolvable:$true] %s30_s12 }
   0x7   :  { %35 = dma.vmem_to_hbm [thread:$0]  %s31_s12, 128, %s33_s15, [#allocation4]  }
   0x8   :  { %94 = dma.done.wait [#allocation4], 128  }
   0x9   :  { %95 = vsyncadd [#allocation4], 4294967168 }
   0xa   :  { %40 = vsyncpa [#allocation3], 1 }
   0xb   :  { %41 = vsyncpa [#allocation4], 1 }

</bundles_post_ra>
